<compile_context>
chip_gen: v7x
topology: tpu7x:2x2x1
jax: 0.10.0
libtpu: 0.0.40
codegen_flags: <defaults>
</compile_context>

<pallas_src>
import functools

import jax
import jax.numpy as jnp
import numpy as np
from jax.experimental import pallas as pl
from jax.experimental.pallas import tpu as pltpu


def _round_up(v, m):
    return ((v + m - 1) // m) * m


def _epilogue(pf, h_ref, ut_ref, y_ref, out_ref, n_target):
    """pf: (bm, n_hid) f32 -> softmax of per-class log-probs into out_ref."""
    # Fuse +h and +U[:, i] into a single bias row per class (one VPU add per
    # class in the hot loop instead of two).
    biases = h_ref[...] + ut_ref[...]                       # (n_target, n_hid)
    yv = y_ref[...]                                         # (1, n_target)

    cols = []
    for i in range(n_target):                               # n_target tiny & static
        z = pf + biases[i:i + 1, :]                         # (bm, n_hid)
        # Stable softplus == Log1PlusExp: exactly 1 exp + 1 log per element.
        sp = jnp.maximum(z, 0.0) + jnp.log1p(jnp.exp(-jnp.abs(z)))
        cols.append(jnp.sum(sp, axis=1, keepdims=True) + yv[:, i:i + 1])  # (bm,1)

    # out[:, c] = 1 / sum_d exp(cp_d - cp_c) == softmax(cp); max-subtract form
    # avoids inf - inf = NaN.  Kept as per-class (bm, 1) columns — no XLU
    # relayout from a concatenate (perf review, minor).
    m = cols[0]
    for c in cols[1:]:
        m = jnp.maximum(m, c)
    exps = [jnp.exp(c - m) for c in cols]
    denom = exps[0]
    for e in exps[1:]:
        denom = denom + e
    inv = 1.0 / denom
    for i in range(n_target):
        out_ref[:, i:i + 1] = (exps[i] * inv).astype(out_ref.dtype)


def rbm_kernel_resident(x_ref, wt_ref, h_ref, ut_ref, y_ref, out_ref,
                        *, n_target, mxu_dtype):
    """Single-K variant: full K in one block, weights resident, no scratch."""
    pf = jnp.dot(x_ref[...].astype(mxu_dtype), wt_ref[...],
                 preferred_element_type=jnp.float32)        # (bm, n_hid) f32
    _epilogue(pf, h_ref, ut_ref, y_ref, out_ref, n_target)


def rbm_kernel_ktiled(x_ref, wt_ref, h_ref, ut_ref, y_ref, out_ref, pf_acc,
                      *, n_target, mxu_dtype):
    """K-tiled variant (large n_vis): f32 VMEM accumulator over the K axis."""
    k = pl.program_id(1)
    nk = pl.num_programs(1)

    @pl.when(k == 0)
    def _init():
        pf_acc[...] = jnp.zeros_like(pf_acc)

    pf_acc[...] += jnp.dot(x_ref[...].astype(mxu_dtype), wt_ref[...],
                           preferred_element_type=jnp.float32)

    @pl.when(k == nk - 1)
    def _finalize():
        _epilogue(pf_acc[...], h_ref, ut_ref, y_ref, out_ref, n_target)


def rbm_forward(x, W, h, U, y, *, use_bf16_matmul=True, _force_tk=None):
    """x: (B, n_vis); W: (n_hid, n_vis); h: (1, n_hid); U: (n_hid, n_target); y: (1, n_target)."""
    B, n_vis = x.shape
    n_hid, n_target = U.shape

    mxu_dtype = jnp.bfloat16 if use_bf16_matmul else jnp.float32
    w_bytes = 2 if use_bf16_matmul else 4

    x = x.astype(jnp.float32)
    # TODO(synk): in production, pass the weight already pre-transposed /
    # pre-cast as (n_vis, n_hid) so this transpose+cast pass over HBM is not
    # paid per call (XLA usually folds it for jitted constants).
    wt = W.T.astype(mxu_dtype)                              # (n_vis, n_hid)
    h = h.astype(jnp.float32)
    ut = U.T.astype(jnp.float32)                            # (n_target, n_hid)
    y = y.astype(jnp.float32)

    # ---- generation-aware VMEM budget (v5e/v6e ~128 MiB, v7x ~64 MiB/TC) ----
    try:
        vmem_cap = int(pltpu.get_tpu_info().vmem_capacity_bytes)
    except Exception:
        vmem_cap = 64 * 1024 * 1024          # conservative (v7x-safe) fallback
    vmem_budget = int(vmem_cap * 0.75)       # leave headroom for compiler scratch
    big_vmem = vmem_budget >= (90 << 20)     # true on 128-MiB parts (v5e/v6e)

    # ---- zero-pad n_vis to a multiple of 128 (exact: padded rows are 0) ----
    n_vis_pad = _round_up(n_vis, 128)
    if n_vis_pad != n_vis:
        x = jnp.pad(x, ((0, 0), (0, n_vis_pad - n_vis)))
        wt = jnp.pad(wt, ((0, n_vis_pad - n_vis), (0, 0)))

    # ---- batch tile ----
    if B <= 128:
        bm = _round_up(B, 8)
    elif B <= 512:
        bm = 128                              # >=2 tiles -> both v7x TCs get work
    else:
        bm = 512 if big_vmem else 256         # v5e/v6e: big tiles; v7x: 256
    B_pad = _round_up(B, bm)
    if B_pad != B:
        x = jnp.pad(x, ((0, B_pad - B), (0, 0)))

    def _small_bytes():
        return 2 * (n_hid * 4 + n_target * n_hid * 4 + n_target * 4
                    + bm * n_target * 4)

    def _vmem_single():
        return (2 * bm * n_vis_pad * 4               # x block, double buffered
                + 2 * n_vis_pad * n_hid * w_bytes    # resident weight block
                + 2 * bm * n_hid * 4                 # pf temp + casted-x slack
                + _small_bytes())

    def _vmem_tiled(tk):
        return (2 * bm * tk * 4
                + 2 * tk * n_hid * w_bytes
                + bm * n_hid * 4                     # accumulator scratch
                + bm * tk * w_bytes                  # casted x temp
                + _small_bytes())

    use_single = (_force_tk is None) and (_vmem_single() <= vmem_budget)
    kw = dict(n_target=n_target, mxu_dtype=mxu_dtype)

    if use_single:
        # ---- resident-weight fast path: no K axis, no accumulator ----
        grid = (B_pad // bm,)
        kernel = functools.partial(rbm_kernel_resident, **kw)
        in_specs = [
            pl.BlockSpec((bm, n_vis_pad), lambda i: (i, 0)),          # x
            pl.BlockSpec((n_vis_pad, n_hid), lambda i: (0, 0)),       # W.T resident
            pl.BlockSpec((1, n_hid), lambda i: (0, 0)),               # h
            pl.BlockSpec((n_target, n_hid), lambda i: (0, 0)),        # U.T
            pl.BlockSpec((1, n_target), lambda i: (0, 0)),            # y
        ]
        out_specs = pl.BlockSpec((bm, n_target), lambda i: (i, 0))
        scratch_shapes = []
        dim_sem = ("parallel",)
        wt_streams = 1
    else:
        # ---- K-tiled accumulator path (very large n_vis) ----
        if _force_tk is not None:
            tk = _force_tk
        else:
            tk = 128
            for cand in (1024, 512, 256):
                if n_vis_pad % cand == 0 and _vmem_tiled(cand) <= vmem_budget:
                    tk = cand
                    break
        assert n_vis_pad % tk == 0
        grid = (B_pad // bm, n_vis_pad // tk)
        kernel = functools.partial(rbm_kernel_ktiled, **kw)
        in_specs = [
            pl.BlockSpec((bm, tk), lambda i, k: (i, k)),              # x
            pl.BlockSpec((tk, n_hid), lambda i, k: (k, 0)),           # W.T
            pl.BlockSpec((1, n_hid), lambda i, k: (0, 0)),            # h
            pl.BlockSpec((n_target, n_hid), lambda i, k: (0, 0)),     # U.T
            pl.BlockSpec((1, n_target), lambda i, k: (0, 0)),         # y
        ]
        out_specs = pl.BlockSpec((bm, n_target), lambda i, k: (i, 0))
        scratch_shapes = [pltpu.VMEM((bm, n_hid), jnp.float32)]
        dim_sem = ("parallel", "arbitrary")
        wt_streams = B_pad // bm

    cost = pl.CostEstimate(
        flops=2 * B_pad * n_vis_pad * n_hid,
        transcendentals=2 * B_pad * n_hid * n_target + 2 * B_pad * n_target,
        bytes_accessed=(B_pad * n_vis_pad * 4
                        + wt_streams * n_vis_pad * n_hid * w_bytes
                        + n_hid * 4 + n_target * n_hid * 4 + n_target * 4
                        + B_pad * n_target * 4),
    )

    out = pl.pallas_call(
        kernel,
        out_shape=jax.ShapeDtypeStruct((B_pad, n_target), jnp.float32),
        grid_spec=pltpu.PrefetchScalarGridSpec(
            num_scalar_prefetch=0,
            grid=grid,
            in_specs=in_specs,
            out_specs=out_specs,
            scratch_shapes=scratch_shapes,
        ),
        compiler_params=pltpu.CompilerParams(
            dimension_semantics=dim_sem,
            vmem_limit_bytes=vmem_budget,
        ),
        cost_estimate=cost,
    )(x, wt, h, ut, y)

    return out[:B]


def rbm_forward_ref(x, W, h, U, y, *, matmul_dtype=None):
    """Pure-numpy (float64) reference mirroring the PyTorch forward pass.

    matmul_dtype=jnp.bfloat16 models the kernel's bf16 MXU inputs (products
    and accumulation stay high precision, like the MXU's f32 accumulate)."""
    def to64(a, rounded):
        a = jnp.asarray(a)
        if rounded is not None:
            a = a.astype(rounded)
        return np.asarray(a.astype(jnp.float32), dtype=np.float64)

    xq = to64(x, matmul_dtype)
    Wq = to64(W, matmul_dtype)
    hn, Un, yn = (np.asarray(v, dtype=np.float64) for v in (h, U, y))

    pf = xq @ Wq.T + hn                                     # (B, n_hid)
    z = pf[:, :, None] + Un[None, :, :]                     # (B, n_hid, n_target)
    sp = np.logaddexp(0.0, z)                               # Log1PlusExp
    cp = sp.sum(axis=1) + yn                                # (B, n_target)
    e = np.exp(cp - cp.max(axis=1, keepdims=True))
    return e / e.sum(axis=1, keepdims=True)                 # == 1 / sum exp(cp_d - cp_c)


if __name__ == "__main__":
    # Module defaults: n_vis=784 (not 128-aligned -> exercises K padding),
    # n_hid=128, n_target=2; small batch.
    B, n_vis, n_hid, n_target = 8, 784, 128, 2

    key = jax.random.PRNGKey(0)
    kx, kw, kh, ku, ky = jax.random.split(key, 5)

    x = jax.random.uniform(kx, (B, n_vis), dtype=jnp.float32)
    W = 0.05 * jax.random.normal(kw, (n_hid, n_vis), dtype=jnp.float32)
    h = 0.05 * jax.random.normal(kh, (1, n_hid), dtype=jnp.float32)
    U = 0.05 * jax.random.normal(ku, (n_hid, n_target), dtype=jnp.float32)
    y = 0.05 * jax.random.normal(ky, (1, n_target), dtype=jnp.float32)

    ref_bf16 = rbm_forward_ref(x, W, h, U, y, matmul_dtype=jnp.bfloat16)
    ref_f64 = rbm_forward_ref(x, W, h, U, y)

    # 1) Resident-weight (single-K) fast path, bf16 MXU.
    out = jax.block_until_ready(rbm_forward(x, W, h, U, y))
    np.testing.assert_allclose(np.asarray(out), ref_bf16, rtol=5e-4, atol=5e-5)
    np.testing.assert_allclose(np.asarray(out), ref_f64, rtol=2e-2, atol=2e-2)

    # 2) Forced K-tiled accumulator path (exercises the very-large-n_vis branch).
    out_k = jax.block_until_ready(rbm_forward(x, W, h, U, y, _force_tk=128))
    np.testing.assert_allclose(np.asarray(out_k), ref_bf16, rtol=5e-4, atol=5e-5)

    # 3) f32-MXU fallback (closer to the PyTorch f32 forward).
    out_f = jax.block_until_ready(rbm_forward(x, W, h, U, y, use_bf16_matmul=False))
    np.testing.assert_allclose(np.asarray(out_f), ref_f64, rtol=2e-2, atol=2e-2)

    print("KERNEL_OK")
</pallas_src>

<mosaic_0001>
module attributes {stable_mosaic.version = 11 : i64} {
  func.func @rbm_kernel_resident(%arg0: i32, %arg1: memref<8x896xf32, #tpu.memory_space<vmem>>, %arg2: memref<896x128xbf16, #tpu.memory_space<vmem>>, %arg3: memref<1x128xf32, #tpu.memory_space<vmem>>, %arg4: memref<2x128xf32, #tpu.memory_space<vmem>>, %arg5: memref<1x2xf32, #tpu.memory_space<vmem>>, %arg6: memref<8x2xf32, #tpu.memory_space<vmem>>) attributes {dimension_semantics = [#tpu.dimension_semantics<parallel>], iteration_bounds = array<i64: 1>, scalar_prefetch = 0 : i64, scratch_operands = 0 : i64, tpu.core_type = #tpu.core_type<tc>, window_params = [{transform_indices = @transform_0, window_bounds = array<i64: 8, 896>}, {pipeline_mode = #tpu.pipeline_mode<synchronous>, transform_indices = @transform_1, window_bounds = array<i64: 896, 128>}, {pipeline_mode = #tpu.pipeline_mode<synchronous>, transform_indices = @transform_2, window_bounds = array<i64: 1, 128>}, {pipeline_mode = #tpu.pipeline_mode<synchronous>, transform_indices = @transform_3, window_bounds = array<i64: 2, 128>}, {pipeline_mode = #tpu.pipeline_mode<synchronous>, transform_indices = @transform_4, window_bounds = array<i64: 1, 2>}, {transform_indices = @transform_5, window_bounds = array<i64: 8, 2>}]} {
    %c0 = arith.constant 0 : index
    %c0_0 = arith.constant 0 : index
    %0 = vector.load %arg1[%c0, %c0_0] : memref<8x896xf32, #tpu.memory_space<vmem>>, vector<8x896xf32>
    %1 = arith.truncf %0 : vector<8x896xf32> to vector<8x896xbf16>
    %c0_1 = arith.constant 0 : index
    %c0_2 = arith.constant 0 : index
    %2 = vector.load %arg2[%c0_1, %c0_2] : memref<896x128xbf16, #tpu.memory_space<vmem>>, vector<896x128xbf16>
    %cst = arith.constant dense<0.000000e+00> : vector<8x128xf32>
    %3 = tpu.matmul %1, %2, %cst {dimension_numbers = #tpu.dot_dimension_numbers<[1], [0], [0], [1], [0, 0, 1, 1], [], []>} : vector<8x896xbf16>, vector<896x128xbf16>, vector<8x128xf32> -> vector<8x128xf32>
    %c0_3 = arith.constant 0 : index
    %c0_4 = arith.constant 0 : index
    %4 = vector.load %arg3[%c0_3, %c0_4] : memref<1x128xf32, #tpu.memory_space<vmem>>, vector<1x128xf32>
    %c0_5 = arith.constant 0 : index
    %c0_6 = arith.constant 0 : index
    %5 = vector.load %arg4[%c0_5, %c0_6] : memref<2x128xf32, #tpu.memory_space<vmem>>, vector<2x128xf32>
    %6 = vector.broadcast %4 : vector<1x128xf32> to vector<2x128xf32>
    %7 = arith.addf %6, %5 : vector<2x128xf32>
    %c0_7 = arith.constant 0 : index
    %c0_8 = arith.constant 0 : index
    %8 = vector.load %arg5[%c0_7, %c0_8] : memref<1x2xf32, #tpu.memory_space<vmem>>, vector<1x2xf32>
    %9 = vector.extract_strided_slice %7 {offsets = [0, 0], sizes = [1, 128], strides = [1, 1]} : vector<2x128xf32> to vector<1x128xf32>
    %10 = vector.broadcast %9 : vector<1x128xf32> to vector<8x128xf32>
    %11 = arith.addf %3, %10 : vector<8x128xf32>
    %cst_9 = arith.constant 0.000000e+00 : f32
    %12 = vector.broadcast %cst_9 : f32 to vector<8x128xf32>
    %13 = arith.maximumf %11, %12 : vector<8x128xf32>
    %14 = math.absf %11 : vector<8x128xf32>
    %cst_10 = arith.constant 0.000000e+00 : f32
    %15 = vector.broadcast %cst_10 : f32 to vector<8x128xf32>
    %16 = arith.subf %15, %14 : vector<8x128xf32>
    %17 = math.exp %16 : vector<8x128xf32>
    %18 = math.log1p %17 : vector<8x128xf32>
    %19 = arith.addf %13, %18 : vector<8x128xf32>
    %cst_11 = arith.constant dense<0.000000e+00> : vector<8xf32>
    %20 = vector.multi_reduction <add>, %19, %cst_11 [1] : vector<8x128xf32> to vector<8xf32>
    %21 = vector.shape_cast %20 : vector<8xf32> to vector<8x1xf32>
    %22 = vector.extract_strided_slice %8 {offsets = [0, 0], sizes = [1, 1], strides = [1, 1]} : vector<1x2xf32> to vector<1x1xf32>
    %23 = vector.broadcast %22 : vector<1x1xf32> to vector<8x1xf32>
    %24 = arith.addf %21, %23 : vector<8x1xf32>
    %25 = vector.extract_strided_slice %7 {offsets = [1, 0], sizes = [1, 128], strides = [1, 1]} : vector<2x128xf32> to vector<1x128xf32>
    %26 = vector.broadcast %25 : vector<1x128xf32> to vector<8x128xf32>
    %27 = arith.addf %3, %26 : vector<8x128xf32>
    %cst_12 = arith.constant 0.000000e+00 : f32
    %28 = vector.broadcast %cst_12 : f32 to vector<8x128xf32>
    %29 = arith.maximumf %27, %28 : vector<8x128xf32>
    %30 = math.absf %27 : vector<8x128xf32>
    %cst_13 = arith.constant 0.000000e+00 : f32
    %31 = vector.broadcast %cst_13 : f32 to vector<8x128xf32>
    %32 = arith.subf %31, %30 : vector<8x128xf32>
    %33 = math.exp %32 : vector<8x128xf32>
    %34 = math.log1p %33 : vector<8x128xf32>
    %35 = arith.addf %29, %34 : vector<8x128xf32>
    %cst_14 = arith.constant dense<0.000000e+00> : vector<8xf32>
    %36 = vector.multi_reduction <add>, %35, %cst_14 [1] : vector<8x128xf32> to vector<8xf32>
    %37 = vector.shape_cast %36 : vector<8xf32> to vector<8x1xf32>
    %38 = vector.extract_strided_slice %8 {offsets = [0, 1], sizes = [1, 1], strides = [1, 1]} : vector<1x2xf32> to vector<1x1xf32>
    %39 = vector.broadcast %38 : vector<1x1xf32> to vector<8x1xf32>
    %40 = arith.addf %37, %39 : vector<8x1xf32>
    %41 = arith.maximumf %24, %40 : vector<8x1xf32>
    %42 = arith.subf %24, %41 : vector<8x1xf32>
    %43 = math.exp %42 : vector<8x1xf32>
    %44 = arith.subf %40, %41 : vector<8x1xf32>
    %45 = math.exp %44 : vector<8x1xf32>
    %46 = arith.addf %43, %45 : vector<8x1xf32>
    %cst_15 = arith.constant 1.000000e+00 : f32
    %47 = vector.broadcast %cst_15 : f32 to vector<8x1xf32>
    %48 = arith.divf %47, %46 : vector<8x1xf32>
    %49 = arith.mulf %43, %48 : vector<8x1xf32>
    %c0_16 = arith.constant 0 : index
    %c0_17 = arith.constant 0 : index
    %50 = vector.load %arg6[%c0_16, %c0_17] : memref<8x2xf32, #tpu.memory_space<vmem>>, vector<8x1xf32>
    tpu.vector_store %arg6[%c0_16, %c0_17], %49 {strides = array<i32>} : memref<8x2xf32, #tpu.memory_space<vmem>>, vector<8x1xf32>,
    %51 = arith.mulf %45, %48 : vector<8x1xf32>
    %c0_18 = arith.constant 0 : index
    %c1 = arith.constant 1 : index
    %52 = vector.load %arg6[%c0_18, %c1] : memref<8x2xf32, #tpu.memory_space<vmem>>, vector<8x1xf32>
    tpu.vector_store %arg6[%c0_18, %c1], %51 {strides = array<i32>} : memref<8x2xf32, #tpu.memory_space<vmem>>, vector<8x1xf32>,
    return
  }
  func.func @transform_0(%arg0: i32) -> (i32, i32) {
    %c0_i32 = arith.constant 0 : i32
    %c0_i32_0 = arith.constant 0 : i32
    return %arg0, %c0_i32 : i32, i32
  }
  func.func @transform_1(%arg0: i32) -> (i32, i32) {
    %c0_i32 = arith.constant 0 : i32
    %c0_i32_0 = arith.constant 0 : i32
    %c0_i32_1 = arith.constant 0 : i32
    return %c0_i32, %c0_i32_0 : i32, i32
  }
  func.func @transform_2(%arg0: i32) -> (i32, i32) {
    %c0_i32 = arith.constant 0 : i32
    %c0_i32_0 = arith.constant 0 : i32
    %c0_i32_1 = arith.constant 0 : i32
    return %c0_i32, %c0_i32_0 : i32, i32
  }
  func.func @transform_3(%arg0: i32) -> (i32, i32) {
    %c0_i32 = arith.constant 0 : i32
    %c0_i32_0 = arith.constant 0 : i32
    %c0_i32_1 = arith.constant 0 : i32
    return %c0_i32, %c0_i32_0 : i32, i32
  }
  func.func @transform_4(%arg0: i32) -> (i32, i32) {
    %c0_i32 = arith.constant 0 : i32
    %c0_i32_0 = arith.constant 0 : i32
    %c0_i32_1 = arith.constant 0 : i32
    return %c0_i32, %c0_i32_0 : i32, i32
  }
  func.func @transform_5(%arg0: i32) -> (i32, i32) {
    %c0_i32 = arith.constant 0 : i32
    %c0_i32_0 = arith.constant 0 : i32
    return %arg0, %c0_i32 : i32, i32
  }
}

</mosaic_0001>

<bundles_post_ra>
// kernel: tpu_custom_call.1
= control target key start
LH: loop header
LB: loop body
LE: loop exit
PB: predicated region body
PF: predicated region fallthrough
CT: control target
= control target key end

     0   :  { %10 = vsyncpa [#allocation3], 0  ;;  %s1141_s0 = inlined_call_operand.hbm [shape: f32[8,896], index: 0, kind: input, shape index: {}]   ;;  %s1142_s1 = inlined_call_operand.hbm [shape: bf16[896,128], index: 1, kind: input, shape index: {}]   ;;  %s1143_s2 = inlined_call_operand.vmem [shape: f32[1,128], index: 2, kind: input, shape index: {}]   ;;  %s1144_s3 = inlined_call_operand.vmem [shape: f32[2,128], index: 3, kind: input, shape index: {}]   ;;  %s1145_s4 = inlined_call_operand.vmem [shape: f32[1,2], index: 4, kind: input, shape index: {}]   ;;  %s1146_s5 = inlined_call_operand.vmem [shape: f32[8,2], index: 5, kind: output, shape index: {}]  }
   0x1   :  { %11 = vsyncpa [#allocation5], 0  ;;  %s1048_s18 = smov [#allocation2]   ;;  %s1049_s20 = smov [#allocation4]  }
   0x2   :  { %s18_s19 = sshll.u32 %s1048_s18, 4  ;;  %s27_s21 = sshll.u32 %s1049_s20, 4  ;;  %s19_s19 = int_to_ptr.vmem [resolvable:$true] %s18_s19  ;;  %s1086_s21 = int_to_ptr.vmem [resolvable:$true] %s27_s21 }
   0x3   :  { %s1000_s24 = scalar_lea.hbm %s1141_s0, 896 }
   0x4   :  { %p1001_p0 = scmp.ne.s32.totalorder %s1141_s0, %s1000_s24  ;;  %p1004_p1 = scmp.lt.u32.totalorder %s1000_s24, %s1141_s0 }
   0x6   :  { %p1006_p2 = pnand %p1004_p1, %p1001_p0 }
   0x8   :  { %1009 = shalt.err (!%p1006_p2)
}
   0x9   :  { %s1010_s29 = scalar_lea.vmem %s19_s19, 896  ;;  %p1015_p4 = scmp.lt.s32.totalorder %s19_s19, %s19_s19 }
   0xa   :  { %p1011_p3 = scmp.ne.s32.totalorder %s19_s19, %s1010_s29  ;;  %p1016_p5 = scmp.lt.s32.totalorder %s1010_s29, %s1010_s29 }
   0xc   :  { %p1017_p6 = por %p1016_p5, %p1015_p4 }
   0xe   :  { %p1018_p7 = pnand %p1017_p6, %p1011_p3 }
  0x10   :  { %1021 = shalt.err (!%p1018_p7)
}
  0x11   :  { %21 = dma.hbm_to_vmem [thread:$0]  %s1141_s0, 896, %s19_s19, [#allocation3]  }
  0x12   :  { %s1022_s9 = scalar_lea.hbm %s1142_s1, 7168 }
  0x13   :  { %p1023_p8 = scmp.ne.s32.totalorder %s1142_s1, %s1022_s9  ;;  %p1026_p9 = scmp.lt.u32.totalorder %s1022_s9, %s1142_s1 }
  0x15   :  { %p1028_p10 = pnand %p1026_p9, %p1023_p8 }
  0x17   :  { %1031 = shalt.err (!%p1028_p10)
}
  0x18   :  { %s1032_s14 = scalar_lea.vmem %s1086_s21, 7168  ;;  %p1037_p12 = scmp.lt.s32.totalorder %s1086_s21, %s1086_s21 }
  0x19   :  { %p1033_p11 = scmp.ne.s32.totalorder %s1086_s21, %s1032_s14  ;;  %p1038_p13 = scmp.lt.s32.totalorder %s1032_s14, %s1032_s14 }
  0x1b   :  { %p1039_p0 = por %p1038_p13, %p1037_p12 }
  0x1d   :  { %p1040_p1 = pnand %p1039_p0, %p1033_p11 }
  0x1f   :  { %1043 = shalt.err (!%p1040_p1)
}
  0x20   :  { %s1050_s0 = smov 64   ;;  %s1051_s15 = smov 4  }
  0x21   :  { %33 = dma.hbm_to_vmem [thread:$0]  %s1142_s1, 7168, %s1086_s21, [#allocation5], %s1050_s0, %s1050_s0, %s1051_s15  }
  0x22   :  { %1044 = dma.done.wait [#allocation3], 896  }
  0x23   :  { %1045 = vsyncadd [#allocation3], 4294966400 }
  0x24   :  { %1046 = dma.done.wait [#allocation5], 7168  }
  0x25   :  { %1047 = vsyncadd [#allocation5], 4294960128  ;;  %v930_v0 = vld [vmem:[#allocation4 + $0x40] sm:$0xff]   ;;  %v934_v4 = vld [vmem:[#allocation4 + $0x48] sm:$0xff]   ;;  %v1052_v41 = vmov 0.0   ;;  %vm1053_vm0 = vmmov 0  }
  0x26   :  { %v931_v1 = vld [vmem:[#allocation4 + $0xc0] sm:$0xff]   ;;  %827 = vmatprep.subr.bf16.mxu0 %v930_v0  ;;  %v935_v5 = vld [vmem:[#allocation4 + $0xc8] sm:$0xff]   ;;  %v938_v8 = vld [vmem:[#allocation4 + $0x50] sm:$0xff]   ;;  %s1054_s21 = smov 127   ;;  %s1055_s22 = smov 1   ;;  %vm754_vm3 = vcmask 7168  }
  0x27   :  { %v932_v2 = vld [vmem:[#allocation4] sm:$0xff]   ;;  %849 = vmatprep.subr.bf16.mxu1 %v931_v1  ;;  %v936_v6 = vld [vmem:[#allocation4 + $0x8] sm:$0xff]   ;;  %v939_v9 = vld [vmem:[#allocation4 + $0xd0] sm:$0xff]   ;;  %vm761_vm4 = vcmask 15368  }
  0x28   :  { %v933_v3 = vld [vmem:[#allocation4 + $0x80] sm:$0xff]   ;;  %828 = vmatpush3.bf16.msra.mxu0 %v932_v2  ;;  %v937_v7 = vld [vmem:[#allocation4 + $0x88] sm:$0xff]   ;;  %v940_v10 = vld [vmem:[#allocation4 + $0x10] sm:$0xff]  }
  0x29   :  { %850 = vmatpush3.bf16.msra.mxu1 %v933_v3  ;;  %829 = vmatprep.subr.bf16.mxu0 %v934_v4  ;;  %v941_v11 = vld [vmem:[#allocation4 + $0x90] sm:$0xff]   ;;  %v942_v12 = vld [vmem:[#allocation4 + $0x58] sm:$0xff]   ;;  %v946_v16 = vld [vmem:[#allocation4 + $0x60] sm:$0xff]  }
  0x2a   :  { %851 = vmatprep.subr.bf16.mxu1 %v935_v5  ;;  %v943_v13 = vld [vmem:[#allocation4 + $0xd8] sm:$0xff]   ;;  %v947_v17 = vld [vmem:[#allocation4 + $0xe0] sm:$0xff]   ;;  %v950_v20 = vld [vmem:[#allocation4 + $0x68] sm:$0xff]  }
  0x2b   :  { %v944_v14 = vld [vmem:[#allocation4 + $0x18] sm:$0xff]   ;;  %v948_v18 = vld [vmem:[#allocation4 + $0x20] sm:$0xff]   ;;  %v951_v21 = vld [vmem:[#allocation4 + $0xe8] sm:$0xff]  }
  0x2c   :  { %830 = vmatpush3.bf16.msra.mxu0 %v936_v6  ;;  %v945_v15 = vld [vmem:[#allocation4 + $0x98] sm:$0xff]   ;;  %v949_v19 = vld [vmem:[#allocation4 + $0xa0] sm:$0xff]   ;;  %v952_v22 = vld [vmem:[#allocation4 + $0x28] sm:$0xff]  }
  0x2d   :  { %852 = vmatpush3.bf16.msra.mxu1 %v937_v7  ;;  %831 = vmatprep.subr.bf16.mxu0 %v938_v8  ;;  %v953_v23 = vld [vmem:[#allocation4 + $0xa8] sm:$0xff]   ;;  %v954_v24 = vld [vmem:[#allocation4 + $0x70] sm:$0xff]   ;;  %v958_v28 = vld [vmem:[#allocation4 + $0x78] sm:$0xff]  }
  0x2e   :  { %853 = vmatprep.subr.bf16.mxu1 %v939_v9  ;;  %v955_v25 = vld [vmem:[#allocation4 + $0xf0] sm:$0xff]   ;;  %v959_v29 = vld [vmem:[#allocation4 + $0xf8] sm:$0xff]   ;;  %v50_v33 = vld [vmem:[#allocation2 + $0x18] sm:$0xff] }
  0x2f   :  { %v956_v26 = vld [vmem:[#allocation4 + $0x30] sm:$0xff]   ;;  %v960_v30 = vld [vmem:[#allocation4 + $0x38] sm:$0xff]   ;;  %v47_v34 = vld [vmem:[#allocation2] sm:$0xff]  ;;  %v57_v36 = vpack.c.bf16 %v50_v33, %v50_v33 }
  0x30   :  { %832 = vmatpush3.bf16.msra.mxu0 %v940_v10  ;;  %v957_v27 = vld [vmem:[#allocation4 + $0xb0] sm:$0xff]   ;;  %v961_v31 = vld [vmem:[#allocation4 + $0xb8] sm:$0xff]   ;;  %v54_v37 = vpack.c.bf16 %v47_v34, %v47_v34  ;;  %v962_v40 = vld [vmem:[#allocation4 + $0x140] sm:$0xff]  }
  0x31   :  { %854 = vmatpush3.bf16.msra.mxu1 %v941_v11  ;;  %833 = vmatprep.subr.bf16.mxu0 %v942_v12  ;;  %v48_v32 = vld [vmem:[#allocation2 + $0x8] sm:$0xff]  ;;  %v49_v38 = vld [vmem:[#allocation2 + $0x10] sm:$0xff]  ;;  %v963_v42 = vld [vmem:[#allocation4 + $0x100] sm:$0xff]  }
  0x32   :  { %855 = vmatprep.subr.bf16.mxu1 %v943_v13  ;;  %v55_v35 = vpack.c.bf16 %v48_v32, %v48_v32  ;;  %v56_v39 = vpack.c.bf16 %v49_v38, %v49_v38  ;;  %581 = vmatprep.mubr.bf16.mxu1 %v57_v36  ;;  %v964_v43 = vld [vmem:[#allocation4 + $0x180] sm:$0xff]   ;;  %v965_v44 = vld [vmem:[#allocation4 + $0x148] sm:$0xff]   ;;  %v968_v47 = vld [vmem:[#allocation4 + $0x150] sm:$0xff]  }
  0x33   :  { %v966_v45 = vld [vmem:[#allocation4 + $0x108] sm:$0xff]   ;;  %v969_v48 = vld [vmem:[#allocation4 + $0x110] sm:$0xff]   ;;  %v971_v50 = vld [vmem:[#allocation4 + $0x158] sm:$0xff]  }
  0x34   :  { %834 = vmatpush3.bf16.msra.mxu0 %v944_v14  ;;  %541 = vmatprep.mubr.bf16.mxu0 %v55_v35  ;;  %v967_v46 = vld [vmem:[#allocation4 + $0x188] sm:$0xff]   ;;  %v970_v49 = vld [vmem:[#allocation4 + $0x190] sm:$0xff]   ;;  %v972_v51 = vld [vmem:[#allocation4 + $0x118] sm:$0xff]  }
  0x35   :  { %856 = vmatpush3.bf16.msra.mxu1 %v945_v15  ;;  %835 = vmatprep.subr.bf16.mxu0 %v946_v16  ;;  %v973_v52 = vld [vmem:[#allocation4 + $0x198] sm:$0xff]   ;;  %v974_v53 = vld [vmem:[#allocation4 + $0x160] sm:$0xff]   ;;  %v977_v56 = vld [vmem:[#allocation4 + $0x168] sm:$0xff]  }
  0x36   :  { %857 = vmatprep.subr.bf16.mxu1 %v947_v17  ;;  %v975_v54 = vld [vmem:[#allocation4 + $0x120] sm:$0xff]   ;;  %v978_v57 = vld [vmem:[#allocation4 + $0x128] sm:$0xff]   ;;  %v980_v59 = vld [vmem:[#allocation4 + $0x170] sm:$0xff]  }
  0x37   :  { %v976_v55 = vld [vmem:[#allocation4 + $0x1a0] sm:$0xff]   ;;  %v979_v58 = vld [vmem:[#allocation4 + $0x1a8] sm:$0xff]   ;;  %v52_v60 = vld [vmem:[#allocation2 + $0x28] sm:$0xff] }
  0x38   :  { %836 = vmatpush3.bf16.msra.mxu0 %v948_v18  ;;  %v59_v61 = vpack.c.bf16 %v52_v60, %v52_v60  ;;  %v981_v62 = vld [vmem:[#allocation4 + $0x130] sm:$0xff]   ;;  %v983_v0 = vld [vmem:[#allocation4 + $0x178] sm:$0xff]   ;;  %v51_v3 = vld [vmem:[#allocation2 + $0x20] sm:$0xff]  ;;  %v679_v18 = vlaneseq }
  0x39   :  { %858 = vmatpush3.bf16.msra.mxu1 %v949_v19  ;;  %837 = vmatprep.subr.bf16.mxu0 %v950_v20  ;;  %v982_v63 = vld [vmem:[#allocation4 + $0x1b0] sm:$0xff]   ;;  %v984_v1 = vld [vmem:[#allocation4 + $0x138] sm:$0xff]   ;;  %v58_v5 = vpack.c.bf16 %v51_v3, %v51_v3  ;;  %v825_v20 = vld [vmem:[%s1143_s2] ss:$0 sm:$0xff] }
  0x3a   :  { %859 = vmatprep.subr.bf16.mxu1 %v951_v21  ;;  %v985_v2 = vld [vmem:[#allocation4 + $0x1b8] sm:$0xff]   ;;  %v680_v19 = vshrl.u32 %v679_v18, 7  ;;  %v670_v21 = vld [vmem:[%s1144_s3] sm:$0x3] }
  0x3b   :  { %v53_v4 = vld [vmem:[#allocation2 + $0x30] sm:$0xff] }
  0x3c   :  { %838 = vmatpush3.bf16.msra.mxu0 %v952_v22  ;;  %v60_v6 = vpack.c.bf16 %v53_v4, %v53_v4  ;;  %v826_v4 = vld [vmem:[%s1145_s4] ss:$0 sm:$0xff] }
  0x3d   :  { %860 = vmatpush3.bf16.msra.mxu1 %v953_v23  ;;  %839 = vmatprep.subr.bf16.mxu0 %v954_v24  ;;  %v677_v24 = vadd.f32 %v825_v20, %v670_v21 }
  0x3e   :  { %861 = vmatprep.subr.bf16.mxu1 %v955_v25  ;;  %v681_v25 = vsub.s32 0, %v680_v19 }
  0x40   :  { %840 = vmatpush3.bf16.msra.mxu0 %v956_v26  ;;  %v710_v26 = vsub.s32 1, %v680_v19  ;;  %v682_v35 = vrot.slane %v677_v24, %v681_v25 }
  0x41   :  { %862 = vmatpush3.bf16.msra.mxu1 %v957_v27  ;;  %841 = vmatprep.subr.bf16.mxu0 %v958_v28 }
  0x42   :  { %863 = vmatprep.subr.bf16.mxu1 %v959_v29  ;;  %v711_v36 = vrot.slane %v677_v24, %v710_v26 }
  0x44   :  { %842 = vmatpush3.bf16.msra.mxu0 %v960_v30 }
  0x45   :  { %864 = vmatpush3.bf16.msra.mxu1 %v961_v31  ;;  %871 = vmatprep.subr.bf16.mxu0 %v962_v40 }
  0x46   :  { %902 = vmatprep.subr.bf16.mxu1 %v1052_v41 }
  0x47   :  { %542 = vmatmul.mubr.bf16.vlgmr.msra.gmra.mrb[0].mxu0 %v54_v37 }
  0x48   :  { %582 = vmatmul.mubr.bf16.vlgmr.msra.gmra.mrb[0].mxu1 %v56_v39  ;;  %872 = vmatpush3.bf16.msra.mxu0 %v963_v42 }
  0x49   :  { %918 = vmatprep.mubr.msk.bf16.mxu1 %vm1053_vm0, %v1052_v41  ;;  %903 = vmatpush3.bf16.msra.mxu1 %v964_v43 }
  0x4a   :  { %873 = vmatprep.subr.bf16.mxu0 %v965_v44  ;;  %904 = vmatprep.subr.bf16.mxu1 %v1052_v41 }
  0x4b   :  { %621 = vmatprep.mubr.bf16.mxu0 %v59_v61 }
  0x4c   :  { %874 = vmatpush3.bf16.msra.mxu0 %v966_v45 }
  0x4d   :  { %905 = vmatpush3.bf16.msra.mxu1 %v967_v46  ;;  %875 = vmatprep.subr.bf16.mxu0 %v968_v47 }
  0x4e   :  { %906 = vmatprep.subr.bf16.mxu1 %v1052_v41 }
  0x50   :  { %876 = vmatpush3.bf16.msra.mxu0 %v969_v48 }
  0x51   :  { %907 = vmatpush3.bf16.msra.mxu1 %v970_v49  ;;  %877 = vmatprep.subr.bf16.mxu0 %v971_v50 }
  0x52   :  { %908 = vmatprep.subr.bf16.mxu1 %v1052_v41 }
  0x54   :  { %878 = vmatpush3.bf16.msra.mxu0 %v972_v51 }
  0x55   :  { %909 = vmatpush3.bf16.msra.mxu1 %v973_v52  ;;  %879 = vmatprep.subr.bf16.mxu0 %v974_v53 }
  0x56   :  { %910 = vmatprep.subr.bf16.mxu1 %v1052_v41 }
  0x58   :  { %880 = vmatpush3.bf16.msra.mxu0 %v975_v54 }
  0x59   :  { %911 = vmatpush3.bf16.msra.mxu1 %v976_v55  ;;  %881 = vmatprep.subr.bf16.mxu0 %v977_v56 }
  0x5a   :  { %912 = vmatprep.subr.bf16.mxu1 %v1052_v41 }
  0x5c   :  { %882 = vmatpush3.bf16.msra.mxu0 %v978_v57 }
  0x5d   :  { %913 = vmatpush3.bf16.msra.mxu1 %v979_v58  ;;  %883 = vmatprep.subr.bf16.mxu0 %v980_v59 }
  0x5e   :  { %914 = vmatprep.subr.bf16.mxu1 %v1052_v41 }
  0x60   :  { %884 = vmatpush3.bf16.msra.mxu0 %v981_v62 }
  0x61   :  { %915 = vmatpush3.bf16.msra.mxu1 %v982_v63  ;;  %885 = vmatprep.subr.bf16.mxu0 %v983_v0 }
  0x62   :  { %916 = vmatprep.subr.bf16.mxu1 %v1052_v41 }
  0x64   :  { %886 = vmatpush3.bf16.msra.mxu0 %v984_v1 }
  0x65   :  { %917 = vmatpush3.bf16.msra.mxu1 %v985_v2 }
  0x67   :  { %622 = vmatmul.mubr.bf16.vlgmr.msra.gmra.mrb[4].mxu0 %v58_v5 }
  0x68   :  { %919 = vmatmul.mubr.bf16.vlgmr.msra.gmra.mrb[4].mxu1 %v60_v6 }
 0x11a   :  { %v843_v7 = vpop.f32.mrb[0].mxu0 }
 0x11b   :  { %v865_v8 = vpop.f32.mrb[0].mxu1  ;;  %v844_v9 = vpop.f32.mrb[1].mxu0 }
 0x11c   :  { %v866_v10 = vpop.f32.mrb[1].mxu1  ;;  %v845_v11 = vadd.f32 %v844_v9, %v843_v7  ;;  %v846_v13 = vpop.f32.mrb[2].mxu0 }
 0x11d   :  { %v867_v12 = vadd.f32 %v866_v10, %v865_v8  ;;  %v868_v14 = vpop.f32.mrb[2].mxu1  ;;  %v847_v15 = vpop.f32.mrb[3].mxu0 }
 0x11e   :  { %v869_v16 = vpop.f32.mrb[3].mxu1 }
 0x11f   :  { %v584_v17 = vadd.f32 %v867_v12, %v845_v11 }
 0x13a   :  { %v887_v22 = vpop.f32.mrb[4].mxu0 }
 0x13b   :  { %v663_v23 = vpop.f32.mrb[4].mxu1  ;;  %v888_v27 = vpop.f32.mrb[5].mxu0 }
 0x13c   :  { %v920_v28 = vpop.f32.mrb[5].mxu1  ;;  %v889_v29 = vadd.f32 %v888_v27, %v887_v22  ;;  %v890_v30 = vpop.f32.mrb[6].mxu0 }
 0x13d   :  { %v666_v31 = vpop.f32.mrb[6].mxu1  ;;  %v891_v32 = vpop.f32.mrb[7].mxu0 }
 0x13e   :  { %v921_v33 = vpop.f32.mrb[7].mxu1  ;;  %v624_v34 = vadd.f32 %v889_v29, %v584_v17 }
 0x140   :  { %v664_v37 = vadd.f32 %v663_v23, %v624_v34 }
 0x142   :  { %v683_v38 = vadd.f32 %v682_v35, %v664_v37  ;;  %v712_v39 = vadd.f32 %v711_v36, %v664_v37 }
 0x144   :  { %v685_v40 = vand.u32 2147483647, %v683_v38  ;;  %v714_v41 = vand.u32 2147483647, %v712_v39  ;;  %v713_v61 = vmax.f32 %v712_v39, 0.0  ;;  %v684_v2 = vmax.f32 %v683_v38, 0.0 }
 0x146   :  { %v686_v42 = vsub.f32 0.0, %v685_v40  ;;  %v715_v43 = vsub.f32 0.0, %v714_v41 }
 0x148   :  { %v687_v44 = vmul.f32 1.442695, %v686_v42  ;;  %v716_v45 = vmul.f32 1.442695, %v715_v43 }
 0x14a   :  { %986 = vpow2.f32 %v687_v44 }
 0x14b   :  { %988 = vpow2.f32 %v716_v45 }
 0x154   :  { %v987_v46 = vpop.eup %986 }
 0x155   :  { %v989_v47 = vpop.eup %988  ;;  %v689_v48 = vadd.f32 1.0, %v987_v46  ;;  %v692_v51 = vmul.f32 -0.5, %v987_v46  ;;  %v695_v57 = vand.u32 2147483647, %v987_v46 }
 0x156   :  { %v718_v49 = vadd.f32 1.0, %v989_v47  ;;  %v721_v50 = vmul.f32 -0.5, %v989_v47  ;;  %v724_v53 = vand.u32 2147483647, %v989_v47 }
 0x157   :  { %990 = vlog2.f32 %v689_v48  ;;  %v693_v55 = vadd.f32 1.0, %v692_v51  ;;  %vm696_vm2 = vcmp.lt.f32.partialorder %v695_v57, 0.0004427343 }
 0x158   :  { %992 = vlog2.f32 %v718_v49  ;;  %v722_v52 = vadd.f32 1.0, %v721_v50  ;;  %vm725_vm1 = vcmp.lt.f32.partialorder %v724_v53, 0.0004427343 }
 0x159   :  { %v694_v63 = vmul.f32 %v987_v46, %v693_v55 }
 0x15a   :  { %v723_v59 = vmul.f32 %v989_v47, %v722_v52 }
 0x161   :  { %v991_v54 = vpop.eup %990 }
 0x162   :  { %v993_v56 = vpop.eup %992  ;;  %v691_v60 = vmul.f32 0.6931472, %v991_v54 }
 0x163   :  { %v720_v58 = vmul.f32 0.6931472, %v993_v56 }
 0x164   :  { %v697_v1 = vsel %vm696_vm2, %v694_v63, %v691_v60 }
 0x165   :  { %v726_v62 = vsel %vm725_vm1, %v723_v59, %v720_v58  ;;  %v698_v3 = vadd.f32 %v697_v1, %v684_v2 }
 0x166   :  { %v727_v0 = vadd.f32 %v726_v62, %v713_v61 }
 0x168   :  { %728 = vadd.xlane.f32.xlu0 %v727_v0 }
 0x16c   :  { %699 = vadd.xlane.f32.xlu0 %v698_v3 }
 0x1f5   :  { %v729_v5 = vpop.xlane.xlu0 %728 }
 0x1f6   :  { %v730_v6 = vadd.f32 %v826_v4, %v729_v5 }
 0x1f8   :  { %732 = vrot.lane.b32.xlu1 %v730_v6, %s1054_s21 }
 0x1f9   :  { %v700_v7 = vpop.xlane.xlu0 %699 }
 0x1fa   :  { %v707_v8 = vadd.f32 %v826_v4, %v700_v7 }
 0x26a   :  { %v733_v9 = vpop.permute.xlu1 %732 }
 0x26b   :  { %v735_v10 = vmax.f32 %v707_v8, %v733_v9 }
 0x26d   :  { %v736_v11 = vsub.f32 %v707_v8, %v735_v10  ;;  %740 = vrot.lane.b32.xlu1 %v735_v10, %s1055_s22 }
 0x26f   :  { %v737_v16 = vmul.f32 1.442695, %v736_v11 }
 0x2df   :  { %v741_v12 = vpop.permute.xlu1 %740 }
 0x2e0   :  { %v743_v13 = vsub.f32 %v730_v6, %v741_v12 }
 0x2e2   :  { %v744_v14 = vmul.f32 1.442695, %v743_v13 }
 0x2e4   :  { %994 = vpow2.f32 %v744_v14 }
 0x2e5   :  { %996 = vpow2.f32 %v737_v16 }
 0x2ee   :  { %v995_v15 = vpop.eup %994 }
 0x2ef   :  { %747 = vrot.lane.b32.xlu0 %v995_v15, %s1054_s21  ;;  %v997_v17 = vpop.eup %996 }
 0x361   :  { %v748_v18 = vpop.permute.xlu0 %747 }
 0x362   :  { %v750_v19 = vadd.f32 %v997_v17, %v748_v18 }
 0x364   :  { %998 = vrcp.f32 %v750_v19 }
 0x36e   :  { %v999_v20 = vpop.eup %998 }
 0x36f   :  { %v753_v21 = vmul.f32 %v999_v20, %v997_v17  ;;  %757 = vrot.lane.b32.xlu1 %v999_v20, %s1055_s22 }
 0x371   :  { %755 = vst.msk [vmem:[%s1146_s5] sm:$0xff] %vm754_vm3, %v753_v21 }
 0x3e1   :  { %v758_v22 = vpop.permute.xlu1 %757 }
 0x3e2   :  { %v760_v23 = vmul.f32 %v995_v15, %v758_v22 }
 0x3e4   :  { %762 = vst.msk [vmem:[%s1146_s5] sm:$0xff] %vm761_vm4, %v760_v23 }
 0x3e5   :  { %767 = vsyncpa [#allocation3], 1 }
 0x3e6   :  { %768 = vsyncpa [#allocation5], 1 }

</bundles_post_ra>
